<compile_context>
chip_gen: v7x
topology: tpu7x:2x2x1
jax: 0.10.0
libtpu: 0.0.40
codegen_flags: <defaults>
</compile_context>

<pallas_src>
import jax
import jax.numpy as jnp
from jax import lax
from jax.experimental import pallas as pl
from jax.experimental.pallas import tpu as pltpu


def _scatter_image_kernel(xx_ref, yy_ref, src_ref, out_ref):
    """Zero this row-tile, then paint the points that land in it.

    xx_ref, yy_ref : SMEM int32 (N,)   row / col index of each point
    src_ref        : SMEM float32 (N,) value of each point
    out_ref        : VMEM float32 (tm, size) row-tile of the output image
    """
    tm, size = out_ref.shape
    row0 = pl.program_id(0) * tm

    # Zero-init once per tile.
    out_ref[...] = jnp.zeros((tm, size), out_ref.dtype)

    # Hoisted lane-index iota (JAX does not CSE broadcast_in_dim).
    cols = lax.broadcasted_iota(jnp.int32, (1, size), 1)
    n = xx_ref.shape[0]

    def paint(k):
        xk = xx_ref[k]

        # Cheap scalar gate: most points are skipped by most row-tiles.
        @pl.when((xk >= row0) & (xk < row0 + tm))
        def _():
            local = xk - row0
            row = out_ref[pl.ds(local, 1), :]
            out_ref[pl.ds(local, 1), :] = jnp.where(
                cols == yy_ref[k], src_ref[k], row
            )

    if n <= 16:
        # Fully unrolled for small static N (LLO can overlap the SMEM scalar
        # loads with the row selects/stores).
        for k in range(n):
            paint(k)
    else:
        @pl.loop(0, n)
        def _(k):
            paint(k)


def _pick_row_tile(size):
    """Largest multiple-of-8 divisor of `size` under a conservative per-buffer
    VMEM budget, preferring >= 2 grid steps (megacore sharding on v7x)."""
    lane_padded = -(-size // 128) * 128
    budget = 4 * 1024 * 1024  # bytes per output buffer (x2 when double-buffered)
    cand = [
        d for d in range(8, size + 1, 8)
        if size % d == 0 and d * lane_padded * 4 <= budget
    ]
    if not cand:
        # size not a multiple of 8 (or tiny): full-extent block is the only
        # legal (8,128)-compatible option.
        return size
    multi = [d for d in cand if size // d >= 2]
    return max(multi) if multi else max(cand)


def visual_imitation_hard(x, size):
    """JAX/Pallas equivalent of VisualImitation_hard(size).forward(x).

    x : (N, 3) float32.  x[:, :2] are positions in [0, 1), x[:, 2] is the
    value.  Returns a (size, size) float32 image I with
        I[min(floor(x0*size), size-1), min(floor(x1*size), size-1)] = x2
    and zeros elsewhere.
    """
    # Index computation (glue; matches self.row_idx exactly: floor then min).
    xx = jnp.minimum(jnp.floor(x[:, 0] * size).astype(jnp.int32), size - 1)
    yy = jnp.minimum(jnp.floor(x[:, 1] * size).astype(jnp.int32), size - 1)
    src = x[:, 2].astype(jnp.float32)

    tm = _pick_row_tile(size)
    grid = (size // tm,)

    out = pl.pallas_call(
        _scatter_image_kernel,
        out_shape=jax.ShapeDtypeStruct((size, size), jnp.float32),
        grid=grid,
        in_specs=[
            pl.BlockSpec(memory_space=pltpu.MemorySpace.SMEM),  # xx
            pl.BlockSpec(memory_space=pltpu.MemorySpace.SMEM),  # yy
            pl.BlockSpec(memory_space=pltpu.MemorySpace.SMEM),  # src
        ],
        out_specs=pl.BlockSpec((tm, size), lambda i: (i, 0)),
        compiler_params=pltpu.CompilerParams(
            dimension_semantics=("parallel",),
            vmem_limit_bytes=32 << 20,  # safe on v5e/v6e/v7x
        ),
    )(xx, yy, src)
    return out


def _reference(x, size):
    xx = jnp.minimum(jnp.floor(x[:, 0] * size).astype(jnp.int32), size - 1)
    yy = jnp.minimum(jnp.floor(x[:, 1] * size).astype(jnp.int32), size - 1)
    return jnp.zeros((size, size), jnp.float32).at[xx, yy].set(x[:, 2])


if __name__ == "__main__":
    key = jax.random.PRNGKey(0)

    # Test 1: small N (unrolled point loop), size=128 -> tm=64, 2-step grid.
    size1, n1 = 128, 8
    k_pos, k_val, key = jax.random.split(key, 3)
    pos = jax.random.uniform(k_pos, (n1, 2), dtype=jnp.float32)
    val = jax.random.normal(k_val, (n1, 1), dtype=jnp.float32)
    x1 = jnp.concatenate([pos, val], axis=1)
    out1 = jax.block_until_ready(visual_imitation_hard(x1, size1))
    assert out1.shape == (size1, size1)
    assert jnp.allclose(out1, _reference(x1, size1), atol=1e-6)

    # Test 2: larger N (pl.loop path), size=200 (masked-lane tail), tm=40.
    size2, n2 = 200, 40
    k_pos, k_val = jax.random.split(key)
    pos = jax.random.uniform(k_pos, (n2, 2), dtype=jnp.float32)
    val = jax.random.normal(k_val, (n2, 1), dtype=jnp.float32)
    x2 = jnp.concatenate([pos, val], axis=1)
    out2 = jax.block_until_ready(visual_imitation_hard(x2, size2))
    assert out2.shape == (size2, size2)
    assert jnp.allclose(out2, _reference(x2, size2), atol=1e-6)

    print("KERNEL_OK")
</pallas_src>

<mosaic_0001>
module attributes {stable_mosaic.version = 11 : i64} {
  func.func @_scatter_image_kernel(%arg0: i32, %arg1: memref<8xi32, #tpu.memory_space<smem>>, %arg2: memref<8xi32, #tpu.memory_space<smem>>, %arg3: memref<8xf32, #tpu.memory_space<smem>>, %arg4: memref<64x128xf32, #tpu.memory_space<vmem>>) attributes {dimension_semantics = [#tpu.dimension_semantics<parallel>], iteration_bounds = array<i64: 2>, scalar_prefetch = 0 : i64, scratch_operands = 0 : i64, tpu.core_type = #tpu.core_type<tc>, window_params = [{transform_indices = @transform_0, window_bounds = array<i64: 8>}, {transform_indices = @transform_1, window_bounds = array<i64: 8>}, {transform_indices = @transform_2, window_bounds = array<i64: 8>}, {transform_indices = @transform_3, window_bounds = array<i64: 64, 128>}]} {
    %c64_i32 = arith.constant 64 : i32
    %0 = arith.muli %arg0, %c64_i32 : i32
    %cst = arith.constant 0.000000e+00 : f32
    %1 = vector.broadcast %cst : f32 to vector<64x128xf32>
    %c0 = arith.constant 0 : index
    %c0_0 = arith.constant 0 : index
    %2 = vector.load %arg4[%c0, %c0_0] : memref<64x128xf32, #tpu.memory_space<vmem>>, vector<64x128xf32>
    tpu.vector_store %arg4[%c0, %c0_0], %1 {strides = array<i32>} : memref<64x128xf32, #tpu.memory_space<vmem>>, vector<64x128xf32>,
    %3 = tpu.iota {dimensions = array<i32: 1>} : vector<1x128xi32>
    %c0_1 = arith.constant 0 : index
    %4 = memref.load %arg1[%c0_1] : memref<8xi32, #tpu.memory_space<smem>>
    %5 = arith.cmpi sge, %4, %0 : i32
    %c64_i32_2 = arith.constant 64 : i32
    %6 = arith.addi %0, %c64_i32_2 : i32
    %7 = arith.cmpi slt, %4, %6 : i32
    %8 = arith.andi %5, %7 : i1
    %9 = arith.extui %8 : i1 to i32
    %c0_i32 = arith.constant 0 : i32
    %10 = arith.cmpi ne, %9, %c0_i32 : i32
    scf.if %10 {
      %60 = arith.subi %4, %0 : i32
      %61 = arith.index_cast %60 : i32 to index
      %c0_17 = arith.constant 0 : index
      %62 = vector.load %arg4[%61, %c0_17] : memref<64x128xf32, #tpu.memory_space<vmem>>, vector<1x128xf32>
      %c0_18 = arith.constant 0 : index
      %63 = memref.load %arg2[%c0_18] : memref<8xi32, #tpu.memory_space<smem>>
      %64 = vector.broadcast %63 : i32 to vector<1x128xi32>
      %65 = arith.cmpi eq, %3, %64 : vector<1x128xi32>
      %c0_19 = arith.constant 0 : index
      %66 = memref.load %arg3[%c0_19] : memref<8xf32, #tpu.memory_space<smem>>
      %67 = vector.broadcast %66 : f32 to vector<1x128xf32>
      %68 = arith.select %65, %67, %62 : vector<1x128xi1>, vector<1x128xf32>
      %69 = arith.index_cast %60 : i32 to index
      %c0_20 = arith.constant 0 : index
      %70 = vector.load %arg4[%69, %c0_20] : memref<64x128xf32, #tpu.memory_space<vmem>>, vector<1x128xf32>
      tpu.vector_store %arg4[%69, %c0_20], %68 {strides = array<i32>} : memref<64x128xf32, #tpu.memory_space<vmem>>, vector<1x128xf32>,
    } else {
    }
    %c1 = arith.constant 1 : index
    %11 = memref.load %arg1[%c1] : memref<8xi32, #tpu.memory_space<smem>>
    %12 = arith.cmpi sge, %11, %0 : i32
    %c64_i32_3 = arith.constant 64 : i32
    %13 = arith.addi %0, %c64_i32_3 : i32
    %14 = arith.cmpi slt, %11, %13 : i32
    %15 = arith.andi %12, %14 : i1
    %16 = arith.extui %15 : i1 to i32
    %c0_i32_4 = arith.constant 0 : i32
    %17 = arith.cmpi ne, %16, %c0_i32_4 : i32
    scf.if %17 {
      %60 = arith.subi %11, %0 : i32
      %61 = arith.index_cast %60 : i32 to index
      %c0_17 = arith.constant 0 : index
      %62 = vector.load %arg4[%61, %c0_17] : memref<64x128xf32, #tpu.memory_space<vmem>>, vector<1x128xf32>
      %c1_18 = arith.constant 1 : index
      %63 = memref.load %arg2[%c1_18] : memref<8xi32, #tpu.memory_space<smem>>
      %64 = vector.broadcast %63 : i32 to vector<1x128xi32>
      %65 = arith.cmpi eq, %3, %64 : vector<1x128xi32>
      %c1_19 = arith.constant 1 : index
      %66 = memref.load %arg3[%c1_19] : memref<8xf32, #tpu.memory_space<smem>>
      %67 = vector.broadcast %66 : f32 to vector<1x128xf32>
      %68 = arith.select %65, %67, %62 : vector<1x128xi1>, vector<1x128xf32>
      %69 = arith.index_cast %60 : i32 to index
      %c0_20 = arith.constant 0 : index
      %70 = vector.load %arg4[%69, %c0_20] : memref<64x128xf32, #tpu.memory_space<vmem>>, vector<1x128xf32>
      tpu.vector_store %arg4[%69, %c0_20], %68 {strides = array<i32>} : memref<64x128xf32, #tpu.memory_space<vmem>>, vector<1x128xf32>,
    } else {
    }
    %c2 = arith.constant 2 : index
    %18 = memref.load %arg1[%c2] : memref<8xi32, #tpu.memory_space<smem>>
    %19 = arith.cmpi sge, %18, %0 : i32
    %c64_i32_5 = arith.constant 64 : i32
    %20 = arith.addi %0, %c64_i32_5 : i32
    %21 = arith.cmpi slt, %18, %20 : i32
    %22 = arith.andi %19, %21 : i1
    %23 = arith.extui %22 : i1 to i32
    %c0_i32_6 = arith.constant 0 : i32
    %24 = arith.cmpi ne, %23, %c0_i32_6 : i32
    scf.if %24 {
      %60 = arith.subi %18, %0 : i32
      %61 = arith.index_cast %60 : i32 to index
      %c0_17 = arith.constant 0 : index
      %62 = vector.load %arg4[%61, %c0_17] : memref<64x128xf32, #tpu.memory_space<vmem>>, vector<1x128xf32>
      %c2_18 = arith.constant 2 : index
      %63 = memref.load %arg2[%c2_18] : memref<8xi32, #tpu.memory_space<smem>>
      %64 = vector.broadcast %63 : i32 to vector<1x128xi32>
      %65 = arith.cmpi eq, %3, %64 : vector<1x128xi32>
      %c2_19 = arith.constant 2 : index
      %66 = memref.load %arg3[%c2_19] : memref<8xf32, #tpu.memory_space<smem>>
      %67 = vector.broadcast %66 : f32 to vector<1x128xf32>
      %68 = arith.select %65, %67, %62 : vector<1x128xi1>, vector<1x128xf32>
      %69 = arith.index_cast %60 : i32 to index
      %c0_20 = arith.constant 0 : index
      %70 = vector.load %arg4[%69, %c0_20] : memref<64x128xf32, #tpu.memory_space<vmem>>, vector<1x128xf32>
      tpu.vector_store %arg4[%69, %c0_20], %68 {strides = array<i32>} : memref<64x128xf32, #tpu.memory_space<vmem>>, vector<1x128xf32>,
    } else {
    }
    %c3 = arith.constant 3 : index
    %25 = memref.load %arg1[%c3] : memref<8xi32, #tpu.memory_space<smem>>
    %26 = arith.cmpi sge, %25, %0 : i32
    %c64_i32_7 = arith.constant 64 : i32
    %27 = arith.addi %0, %c64_i32_7 : i32
    %28 = arith.cmpi slt, %25, %27 : i32
    %29 = arith.andi %26, %28 : i1
    %30 = arith.extui %29 : i1 to i32
    %c0_i32_8 = arith.constant 0 : i32
    %31 = arith.cmpi ne, %30, %c0_i32_8 : i32
    scf.if %31 {
      %60 = arith.subi %25, %0 : i32
      %61 = arith.index_cast %60 : i32 to index
      %c0_17 = arith.constant 0 : index
      %62 = vector.load %arg4[%61, %c0_17] : memref<64x128xf32, #tpu.memory_space<vmem>>, vector<1x128xf32>
      %c3_18 = arith.constant 3 : index
      %63 = memref.load %arg2[%c3_18] : memref<8xi32, #tpu.memory_space<smem>>
      %64 = vector.broadcast %63 : i32 to vector<1x128xi32>
      %65 = arith.cmpi eq, %3, %64 : vector<1x128xi32>
      %c3_19 = arith.constant 3 : index
      %66 = memref.load %arg3[%c3_19] : memref<8xf32, #tpu.memory_space<smem>>
      %67 = vector.broadcast %66 : f32 to vector<1x128xf32>
      %68 = arith.select %65, %67, %62 : vector<1x128xi1>, vector<1x128xf32>
      %69 = arith.index_cast %60 : i32 to index
      %c0_20 = arith.constant 0 : index
      %70 = vector.load %arg4[%69, %c0_20] : memref<64x128xf32, #tpu.memory_space<vmem>>, vector<1x128xf32>
      tpu.vector_store %arg4[%69, %c0_20], %68 {strides = array<i32>} : memref<64x128xf32, #tpu.memory_space<vmem>>, vector<1x128xf32>,
    } else {
    }
    %c4 = arith.constant 4 : index
    %32 = memref.load %arg1[%c4] : memref<8xi32, #tpu.memory_space<smem>>
    %33 = arith.cmpi sge, %32, %0 : i32
    %c64_i32_9 = arith.constant 64 : i32
    %34 = arith.addi %0, %c64_i32_9 : i32
    %35 = arith.cmpi slt, %32, %34 : i32
    %36 = arith.andi %33, %35 : i1
    %37 = arith.extui %36 : i1 to i32
    %c0_i32_10 = arith.constant 0 : i32
    %38 = arith.cmpi ne, %37, %c0_i32_10 : i32
    scf.if %38 {
      %60 = arith.subi %32, %0 : i32
      %61 = arith.index_cast %60 : i32 to index
      %c0_17 = arith.constant 0 : index
      %62 = vector.load %arg4[%61, %c0_17] : memref<64x128xf32, #tpu.memory_space<vmem>>, vector<1x128xf32>
      %c4_18 = arith.constant 4 : index
      %63 = memref.load %arg2[%c4_18] : memref<8xi32, #tpu.memory_space<smem>>
      %64 = vector.broadcast %63 : i32 to vector<1x128xi32>
      %65 = arith.cmpi eq, %3, %64 : vector<1x128xi32>
      %c4_19 = arith.constant 4 : index
      %66 = memref.load %arg3[%c4_19] : memref<8xf32, #tpu.memory_space<smem>>
      %67 = vector.broadcast %66 : f32 to vector<1x128xf32>
      %68 = arith.select %65, %67, %62 : vector<1x128xi1>, vector<1x128xf32>
      %69 = arith.index_cast %60 : i32 to index
      %c0_20 = arith.constant 0 : index
      %70 = vector.load %arg4[%69, %c0_20] : memref<64x128xf32, #tpu.memory_space<vmem>>, vector<1x128xf32>
      tpu.vector_store %arg4[%69, %c0_20], %68 {strides = array<i32>} : memref<64x128xf32, #tpu.memory_space<vmem>>, vector<1x128xf32>,
    } else {
    }
    %c5 = arith.constant 5 : index
    %39 = memref.load %arg1[%c5] : memref<8xi32, #tpu.memory_space<smem>>
    %40 = arith.cmpi sge, %39, %0 : i32
    %c64_i32_11 = arith.constant 64 : i32
    %41 = arith.addi %0, %c64_i32_11 : i32
    %42 = arith.cmpi slt, %39, %41 : i32
    %43 = arith.andi %40, %42 : i1
    %44 = arith.extui %43 : i1 to i32
    %c0_i32_12 = arith.constant 0 : i32
    %45 = arith.cmpi ne, %44, %c0_i32_12 : i32
    scf.if %45 {
      %60 = arith.subi %39, %0 : i32
      %61 = arith.index_cast %60 : i32 to index
      %c0_17 = arith.constant 0 : index
      %62 = vector.load %arg4[%61, %c0_17] : memref<64x128xf32, #tpu.memory_space<vmem>>, vector<1x128xf32>
      %c5_18 = arith.constant 5 : index
      %63 = memref.load %arg2[%c5_18] : memref<8xi32, #tpu.memory_space<smem>>
      %64 = vector.broadcast %63 : i32 to vector<1x128xi32>
      %65 = arith.cmpi eq, %3, %64 : vector<1x128xi32>
      %c5_19 = arith.constant 5 : index
      %66 = memref.load %arg3[%c5_19] : memref<8xf32, #tpu.memory_space<smem>>
      %67 = vector.broadcast %66 : f32 to vector<1x128xf32>
      %68 = arith.select %65, %67, %62 : vector<1x128xi1>, vector<1x128xf32>
      %69 = arith.index_cast %60 : i32 to index
      %c0_20 = arith.constant 0 : index
      %70 = vector.load %arg4[%69, %c0_20] : memref<64x128xf32, #tpu.memory_space<vmem>>, vector<1x128xf32>
      tpu.vector_store %arg4[%69, %c0_20], %68 {strides = array<i32>} : memref<64x128xf32, #tpu.memory_space<vmem>>, vector<1x128xf32>,
    } else {
    }
    %c6 = arith.constant 6 : index
    %46 = memref.load %arg1[%c6] : memref<8xi32, #tpu.memory_space<smem>>
    %47 = arith.cmpi sge, %46, %0 : i32
    %c64_i32_13 = arith.constant 64 : i32
    %48 = arith.addi %0, %c64_i32_13 : i32
    %49 = arith.cmpi slt, %46, %48 : i32
    %50 = arith.andi %47, %49 : i1
    %51 = arith.extui %50 : i1 to i32
    %c0_i32_14 = arith.constant 0 : i32
    %52 = arith.cmpi ne, %51, %c0_i32_14 : i32
    scf.if %52 {
      %60 = arith.subi %46, %0 : i32
      %61 = arith.index_cast %60 : i32 to index
      %c0_17 = arith.constant 0 : index
      %62 = vector.load %arg4[%61, %c0_17] : memref<64x128xf32, #tpu.memory_space<vmem>>, vector<1x128xf32>
      %c6_18 = arith.constant 6 : index
      %63 = memref.load %arg2[%c6_18] : memref<8xi32, #tpu.memory_space<smem>>
      %64 = vector.broadcast %63 : i32 to vector<1x128xi32>
      %65 = arith.cmpi eq, %3, %64 : vector<1x128xi32>
      %c6_19 = arith.constant 6 : index
      %66 = memref.load %arg3[%c6_19] : memref<8xf32, #tpu.memory_space<smem>>
      %67 = vector.broadcast %66 : f32 to vector<1x128xf32>
      %68 = arith.select %65, %67, %62 : vector<1x128xi1>, vector<1x128xf32>
      %69 = arith.index_cast %60 : i32 to index
      %c0_20 = arith.constant 0 : index
      %70 = vector.load %arg4[%69, %c0_20] : memref<64x128xf32, #tpu.memory_space<vmem>>, vector<1x128xf32>
      tpu.vector_store %arg4[%69, %c0_20], %68 {strides = array<i32>} : memref<64x128xf32, #tpu.memory_space<vmem>>, vector<1x128xf32>,
    } else {
    }
    %c7 = arith.constant 7 : index
    %53 = memref.load %arg1[%c7] : memref<8xi32, #tpu.memory_space<smem>>
    %54 = arith.cmpi sge, %53, %0 : i32
    %c64_i32_15 = arith.constant 64 : i32
    %55 = arith.addi %0, %c64_i32_15 : i32
    %56 = arith.cmpi slt, %53, %55 : i32
    %57 = arith.andi %54, %56 : i1
    %58 = arith.extui %57 : i1 to i32
    %c0_i32_16 = arith.constant 0 : i32
    %59 = arith.cmpi ne, %58, %c0_i32_16 : i32
    scf.if %59 {
      %60 = arith.subi %53, %0 : i32
      %61 = arith.index_cast %60 : i32 to index
      %c0_17 = arith.constant 0 : index
      %62 = vector.load %arg4[%61, %c0_17] : memref<64x128xf32, #tpu.memory_space<vmem>>, vector<1x128xf32>
      %c7_18 = arith.constant 7 : index
      %63 = memref.load %arg2[%c7_18] : memref<8xi32, #tpu.memory_space<smem>>
      %64 = vector.broadcast %63 : i32 to vector<1x128xi32>
      %65 = arith.cmpi eq, %3, %64 : vector<1x128xi32>
      %c7_19 = arith.constant 7 : index
      %66 = memref.load %arg3[%c7_19] : memref<8xf32, #tpu.memory_space<smem>>
      %67 = vector.broadcast %66 : f32 to vector<1x128xf32>
      %68 = arith.select %65, %67, %62 : vector<1x128xi1>, vector<1x128xf32>
      %69 = arith.index_cast %60 : i32 to index
      %c0_20 = arith.constant 0 : index
      %70 = vector.load %arg4[%69, %c0_20] : memref<64x128xf32, #tpu.memory_space<vmem>>, vector<1x128xf32>
      tpu.vector_store %arg4[%69, %c0_20], %68 {strides = array<i32>} : memref<64x128xf32, #tpu.memory_space<vmem>>, vector<1x128xf32>,
    } else {
    }
    return
  }
  func.func @transform_0(%arg0: i32) -> i32 {
    %c0_i32 = arith.constant 0 : i32
    %c0_i32_0 = arith.constant 0 : i32
    return %c0_i32 : i32
  }
  func.func @transform_1(%arg0: i32) -> i32 {
    %c0_i32 = arith.constant 0 : i32
    %c0_i32_0 = arith.constant 0 : i32
    return %c0_i32 : i32
  }
  func.func @transform_2(%arg0: i32) -> i32 {
    %c0_i32 = arith.constant 0 : i32
    %c0_i32_0 = arith.constant 0 : i32
    return %c0_i32 : i32
  }
  func.func @transform_3(%arg0: i32) -> (i32, i32) {
    %c0_i32 = arith.constant 0 : i32
    %c0_i32_0 = arith.constant 0 : i32
    return %arg0, %c0_i32 : i32, i32
  }
}

</mosaic_0001>

<bundles_post_ra>
// kernel: tpu_custom_call.1
= control target key start
LH: loop header
LB: loop body
LE: loop exit
PB: predicated region body
PF: predicated region fallthrough
CT: control target
= control target key end

     0   :  { %8 = vsyncpa [#allocation4], 0  ;;  %s929_s0 = inlined_call_operand.hbm [shape: s32[8], index: 0, kind: input, shape index: {}]   ;;  %s930_s1 = inlined_call_operand.vmem [shape: s32[8], index: 1, kind: input, shape index: {}]   ;;  %s931_s2 = inlined_call_operand.vmem [shape: f32[8], index: 2, kind: input, shape index: {}]   ;;  %s932_s3 = inlined_call_operand.hbm [shape: f32[128,128], index: 3, kind: output, shape index: {}]  }
   0x1   :  { %9 = vsyncpa [#allocation5], 0 }
   0x2   :  { %10 = vsyncpa [#allocation8], 0 }
   0x3   :  { %11 = vsyncpa [#allocation3], 0 }
   0x4   :  { %13 = vsyncpa [#allocation3 + $0x1], 0  ;;  %s699_s12 = smov 0   ;;  %s701_s13 = smov 0  }
   0x5   :  { %s703_s14 = smov 0   ;;  %s705_s15 = smov 0  }
   0x6 LB: > { %s720_s16 = sadd.s32 4294967295, %s670_s15   ;;  %s442_s17 = sadd.s32 4294967294, %s670_s15   ;;  %s670_s15 = sphi %s705_s15, %s948_s15   ;;  %s666_s14 = sphi %s703_s14, %s947_s14   ;;  %s662_s13 = sphi %s701_s13, %s946_s13   ;;  %s658_s12 = sphi %s699_s12, %s945_s12  }
   0x7   : > { %s724_s18 = sadd.s32 1, %s670_s15   ;;  %s89_s19 = sadd.s32 1, %s666_s14 }
   0x8   : > { %s86_s20 = ssub.s32 %s670_s15, %s724_s18  ;;  %p99_p0 = scmp.ne.s32.totalorder %s666_s14, %s662_s13 }
   0x9   : > { %p87_p1 = scmp.eq.s32.totalorder %s86_s20, 0  ;;  %p100_p2 = scmp.eq.s32.totalorder %s720_s16, 1 }
   0xa   : > { %p105_p3 = scmp.ne.s32.totalorder %s662_s13, %s658_s12  ;;  %p106_p4 = scmp.eq.s32.totalorder %s442_s17, 1 }
   0xb   : > { %s735_s21 = scalar_select %p87_p1, %s666_s14, %s89_s19  }
   0xc   : > { %p737_p5 = por %p100_p2, %p99_p0  ;;  %p741_p6 = por %p106_p4, %p105_p3 }
   0xd   : > { %p443_p7 = scmp.ge.s32.totalorder %s670_s15, 1  ;;  %p113_p8 = scmp.lt.s32.totalorder %s670_s15, 3 }
   0xe   : > { %s935_s23 = scalar_select %p741_p6, 1, 0 }
   0xf   : > { %p747_p9 = pnand %p443_p7, %p113_p8  ;;  %p933_p10 = scmp.eq.s32.totalorder %s720_s16, 0 }
  0x10   : > { %s135_s27 = sshll.u32 %s930_s1, 4  ;;  %s146_s30 = sshll.u32 %s931_s2, 4  ;;  %s136_s27 = int_to_ptr.vmem [resolvable:$true] %s135_s27  ;;  %s766_s30 = int_to_ptr.vmem [resolvable:$true] %s146_s30 }
  0x11   : > { %p494_p11 = pneg %p747_p9  ;;  %s553_s7 = scalar_lea.hbm %s929_s0, 16 }
  0x12   : > { %p554_p13 = scmp.ne.s32.totalorder %s929_s0, %s553_s7  ;;  %p560_p3 = scmp.lt.u32.totalorder %s553_s7, %s929_s0 }
  0x13   : > { %p762_p12 = pnand %p933_p10, %p494_p11 }
  0x15   : > { %p555_p0 = pneg %p762_p12 }
  0x17   : > { %p556_p1 = pnand %p555_p0, %p554_p13 }
  0x19   : > { %p557_p2 = pneg %p556_p1 }
  0x1b   : > { %p562_p4 = pnand %p560_p3, %p557_p2 }
  0x1d   : > { %565 = shalt.err (!%p562_p4)
}
  0x1e   : > { %s672_s17 = smov [#allocation2]   ;;  %s566_s25 = scalar_lea.vmem %s136_s27, 16 }
  0x1f   : > { %497 = dma.hbm_to_smem (!%p762_p12), %s929_s0, 16, %s672_s17, [#allocation4]  }
  0x20   : > { %p567_p7 = scmp.ne.s32.totalorder %s136_s27, %s566_s25  ;;  %p574_p13 = scmp.lt.s32.totalorder %s136_s27, %s136_s27 }
  0x21   : > { %p575_p1 = scmp.lt.s32.totalorder %s566_s25, %s566_s25 }
  0x22   : > { %p569_p8 = pnand %p567_p7, %p555_p0 }
  0x23   : > { %p576_p10 = por %p575_p1, %p574_p13 }
  0x24   : > { %p570_p11 = pneg %p569_p8 }
  0x26   : > { %p577_p6 = pnand %p576_p10, %p570_p11 }
  0x28   : > { %580 = shalt.err (!%p577_p6)
}
  0x29   : > { %s673_s26 = smov [#allocation6]   ;;  %s581_s28 = scalar_lea.vmem %s766_s30, 16 }
  0x2a   : > { %500 = dma.vmem_to_smem (!%p762_p12), %s136_s27, 16, %s673_s26, [#allocation5]  }
  0x2b   : > { %p582_p2 = scmp.ne.s32.totalorder %s766_s30, %s581_s28  ;;  %p589_p7 = scmp.lt.s32.totalorder %s766_s30, %s766_s30 }
  0x2c   : > { %p590_p8 = scmp.lt.s32.totalorder %s581_s28, %s581_s28 }
  0x2d   : > { %p584_p3 = pnand %p582_p2, %p555_p0 }
  0x2e   : > { %p591_p13 = por %p590_p8, %p589_p7 }
  0x2f   : > { %p585_p4 = pneg %p584_p3 }
  0x31   : > { %p592_p10 = pnand %p591_p13, %p585_p4 }
  0x33   : > { %595 = shalt.err (!%p592_p10)
}
  0x34   : > { %s674_s29 = smov [#allocation7]   ;;  %159 = sbr.rel (%p747_p9) target bundleno = 247 (0xf7), region = 32 }
  0x35   : > { %503 = dma.vmem_to_smem (!%p762_p12), %s766_s30, 16, %s674_s29, [#allocation8]  }
  0x36   : > { %p938_p6 = scmp.eq.s32.totalorder (!%p747_p9), %s720_s16, 0 }
  0x3b   : > { %641 = dma.done.wait (%p938_p6), [#allocation4], 16   ;;  %p939_p0 = pmov %p938_p6 }
  0x3d   : > { %643 = vsyncadd (%p939_p0), [#allocation4], 4294967280  ;;  %p940_p11 = pmov %p939_p0 }
  0x3e   : > { %p941_p1 = pmov %p939_p0 }
  0x3f   : > { %645 = dma.done.wait (%p940_p11), [#allocation5], 16  }
  0x40   : > { %647 = vsyncadd (%p941_p1), [#allocation5], 4294967280  ;;  %p942_p2 = pmov %p939_p0 }
  0x41   : > { %p943_p12 = pmov %p939_p0 }
  0x42   : > { %649 = dma.done.wait (%p942_p2), [#allocation8], 16  }
  0x43   : > { %651 = vsyncadd (%p943_p12), [#allocation8], 4294967280 }
  0x44   : > { %173 = sfence }
  0x45   : > { %s184_s24 = sand.u32 1, %s662_s13   ;;  %s818_s27 = sshll.u32 %s720_s16, 6  ;;  %v197_v0 = vlaneseq  ;;  %v675_v2 = vmov 0.0  }
  0x46   : > { %s451_s30 = sshll.u32 %s184_s24, 6  ;;  %s199_s4 = sld [smem:[#allocation2]] }
  0x47   : > { %v822_v1 = vand.u32 127, %v197_v0  ;;  %s824_s5 = scalar_lea.vmem [#allocation9], %s451_s30  ;;  %s835_s6 = sadd.s32 64, %s818_s27 }
  0x48   : > { %189 = vst [vmem:[%s824_s5] sm:$0xff] %v675_v2  ;;  %190 = vst [vmem:[%s824_s5 + $0x8] sm:$0xff] %v675_v2 }
  0x49   : > { %191 = vst [vmem:[%s824_s5 + $0x10] sm:$0xff] %v675_v2  ;;  %192 = vst [vmem:[%s824_s5 + $0x18] sm:$0xff] %v675_v2 }
  0x4a   : > { %193 = vst [vmem:[%s824_s5 + $0x20] sm:$0xff] %v675_v2  ;;  %194 = vst [vmem:[%s824_s5 + $0x28] sm:$0xff] %v675_v2 }
  0x4b   : > { %195 = vst [vmem:[%s824_s5 + $0x30] sm:$0xff] %v675_v2  ;;  %196 = vst [vmem:[%s824_s5 + $0x38] sm:$0xff] %v675_v2 }
  0x4c   : > { %p200_p9 = scmp.ge.s32.totalorder %s199_s4, %s818_s27  ;;  %p202_p3 = scmp.lt.s32.totalorder %s199_s4, %s835_s6 }
  0x4e   : > { %p203_p4 = pnand %p202_p3, %p200_p9 }
  0x4f   : > { %s207_s7 = ssub.s32 (!%p203_p4), %s199_s4, %s818_s27  ;;  %s210_s8 = sld [smem:[#allocation6]] (!%p203_p4) }
  0x50   : > { %206 = sbr.rel (%p203_p4) target bundleno = 89 (0x59), region = 48  ;;  %s213_s9 = sld [smem:[#allocation7]] (!%p203_p4) }
  0x51   : > { %s208_s10 = scalar_lea.vmem (!%p203_p4), %s824_s5, %s207_s7 [#allocation9] }
  0x52   : > { %v209_v3 = vld [vmem:[%s208_s10] sm:$0x1] (!%p203_p4) }
  0x55   : > { %v211_v4 = vstv (!%p203_p4), %s210_s8 }
  0x56   : > { %vm212_vm0 = vcmp.eq.s32.totalorder (!%p203_p4), %v822_v1, %v211_v4  ;;  %v214_v5 = vstv (!%p203_p4), %s213_s9 }
  0x57   : > { %v215_v6 = vsel %vm212_vm0, %v214_v5, %v209_v3 }
  0x58   : > { %216 = vst [vmem:[%s208_s10] sm:$0x1] %v215_v6 }
  0x59 PF: > { %s453_s11 = sld [smem:[#allocation2 + $0x1]] }
  0x5f   : > { %p218_p7 = scmp.ge.s32.totalorder %s453_s11, %s818_s27  ;;  %p219_p8 = scmp.lt.s32.totalorder %s453_s11, %s835_s6 }
  0x61   : > { %p220_p13 = pnand %p219_p8, %p218_p7 }
  0x62   : > { %s224_s17 = ssub.s32 (!%p220_p13), %s453_s11, %s818_s27  ;;  %s454_s19 = sld [smem:[#allocation6 + $0x1]] (!%p220_p13) }
  0x63   : > { %223 = sbr.rel (%p220_p13) target bundleno = 108 (0x6c), region = 52  ;;  %s455_s20 = sld [smem:[#allocation7 + $0x1]] (!%p220_p13) }
  0x64   : > { %s225_s25 = scalar_lea.vmem (!%p220_p13), %s824_s5, %s224_s17 [#allocation9] }
  0x65   : > { %v226_v7 = vld [vmem:[%s225_s25] sm:$0x1] (!%p220_p13) }
  0x68   : > { %v228_v8 = vstv (!%p220_p13), %s454_s19 }
  0x69   : > { %vm229_vm1 = vcmp.eq.s32.totalorder (!%p220_p13), %v822_v1, %v228_v8  ;;  %v231_v9 = vstv (!%p220_p13), %s455_s20 }
  0x6a   : > { %v232_v10 = vsel %vm229_vm1, %v231_v9, %v226_v7 }
  0x6b   : > { %233 = vst [vmem:[%s225_s25] sm:$0x1] %v232_v10 }
  0x6c PF: > { %s456_s26 = sld [smem:[#allocation2 + $0x2]] }
  0x72   : > { %p235_p10 = scmp.ge.s32.totalorder %s456_s26, %s818_s27  ;;  %p236_p6 = scmp.lt.s32.totalorder %s456_s26, %s835_s6 }
  0x74   : > { %p237_p0 = pnand %p236_p6, %p235_p10 }
  0x75   : > { %s241_s28 = ssub.s32 (!%p237_p0), %s456_s26, %s818_s27  ;;  %s457_s29 = sld [smem:[#allocation6 + $0x2]] (!%p237_p0) }
  0x76   : > { %240 = sbr.rel (%p237_p0) target bundleno = 127 (0x7f), region = 56  ;;  %s458_s30 = sld [smem:[#allocation7 + $0x2]] (!%p237_p0) }
  0x77   : > { %s242_s4 = scalar_lea.vmem (!%p237_p0), %s824_s5, %s241_s28 [#allocation9] }
  0x78   : > { %v243_v11 = vld [vmem:[%s242_s4] sm:$0x1] (!%p237_p0) }
  0x7b   : > { %v245_v12 = vstv (!%p237_p0), %s457_s29 }
  0x7c   : > { %vm246_vm2 = vcmp.eq.s32.totalorder (!%p237_p0), %v822_v1, %v245_v12  ;;  %v248_v13 = vstv (!%p237_p0), %s458_s30 }
  0x7d   : > { %v249_v14 = vsel %vm246_vm2, %v248_v13, %v243_v11 }
  0x7e   : > { %250 = vst [vmem:[%s242_s4] sm:$0x1] %v249_v14 }
  0x7f PF: > { %s459_s7 = sld [smem:[#allocation2 + $0x3]] }
  0x85   : > { %p252_p11 = scmp.ge.s32.totalorder %s459_s7, %s818_s27  ;;  %p253_p1 = scmp.lt.s32.totalorder %s459_s7, %s835_s6 }
  0x87   : > { %p254_p2 = pnand %p253_p1, %p252_p11 }
  0x88   : > { %s258_s8 = ssub.s32 (!%p254_p2), %s459_s7, %s818_s27  ;;  %s460_s9 = sld [smem:[#allocation6 + $0x3]] (!%p254_p2) }
  0x89   : > { %257 = sbr.rel (%p254_p2) target bundleno = 146 (0x92), region = 60  ;;  %s461_s10 = sld [smem:[#allocation7 + $0x3]] (!%p254_p2) }
  0x8a   : > { %s259_s11 = scalar_lea.vmem (!%p254_p2), %s824_s5, %s258_s8 [#allocation9] }
  0x8b   : > { %v260_v15 = vld [vmem:[%s259_s11] sm:$0x1] (!%p254_p2) }
  0x8e   : > { %v262_v16 = vstv (!%p254_p2), %s460_s9 }
  0x8f   : > { %vm263_vm3 = vcmp.eq.s32.totalorder (!%p254_p2), %v822_v1, %v262_v16  ;;  %v265_v17 = vstv (!%p254_p2), %s461_s10 }
  0x90   : > { %v266_v18 = vsel %vm263_vm3, %v265_v17, %v260_v15 }
  0x91   : > { %267 = vst [vmem:[%s259_s11] sm:$0x1] %v266_v18 }
  0x92 PF: > { %s462_s17 = sld [smem:[#allocation2 + $0x4]] }
  0x98   : > { %p269_p12 = scmp.ge.s32.totalorder %s462_s17, %s818_s27  ;;  %p270_p9 = scmp.lt.s32.totalorder %s462_s17, %s835_s6 }
  0x9a   : > { %p271_p3 = pnand %p270_p9, %p269_p12 }
  0x9b   : > { %s275_s19 = ssub.s32 (!%p271_p3), %s462_s17, %s818_s27  ;;  %s463_s20 = sld [smem:[#allocation6 + $0x4]] (!%p271_p3) }
  0x9c   : > { %274 = sbr.rel (%p271_p3) target bundleno = 165 (0xa5), region = 64  ;;  %s464_s25 = sld [smem:[#allocation7 + $0x4]] (!%p271_p3) }
  0x9d   : > { %s276_s26 = scalar_lea.vmem (!%p271_p3), %s824_s5, %s275_s19 [#allocation9] }
  0x9e   : > { %v277_v19 = vld [vmem:[%s276_s26] sm:$0x1] (!%p271_p3) }
  0xa1   : > { %v279_v20 = vstv (!%p271_p3), %s463_s20 }
  0xa2   : > { %vm280_vm4 = vcmp.eq.s32.totalorder (!%p271_p3), %v822_v1, %v279_v20  ;;  %v282_v21 = vstv (!%p271_p3), %s464_s25 }
  0xa3   : > { %v283_v22 = vsel %vm280_vm4, %v282_v21, %v277_v19 }
  0xa4   : > { %284 = vst [vmem:[%s276_s26] sm:$0x1] %v283_v22 }
  0xa5 PF: > { %s465_s28 = sld [smem:[#allocation2 + $0x5]] }
  0xab   : > { %p286_p4 = scmp.ge.s32.totalorder %s465_s28, %s818_s27  ;;  %p287_p7 = scmp.lt.s32.totalorder %s465_s28, %s835_s6 }
  0xad   : > { %p288_p8 = pnand %p287_p7, %p286_p4 }
  0xae   : > { %s292_s29 = ssub.s32 (!%p288_p8), %s465_s28, %s818_s27  ;;  %s466_s30 = sld [smem:[#allocation6 + $0x5]] (!%p288_p8) }
  0xaf   : > { %291 = sbr.rel (%p288_p8) target bundleno = 184 (0xb8), region = 68  ;;  %s467_s4 = sld [smem:[#allocation7 + $0x5]] (!%p288_p8) }
  0xb0   : > { %s293_s7 = scalar_lea.vmem (!%p288_p8), %s824_s5, %s292_s29 [#allocation9] }
  0xb1   : > { %v294_v23 = vld [vmem:[%s293_s7] sm:$0x1] (!%p288_p8) }
  0xb4   : > { %v296_v24 = vstv (!%p288_p8), %s466_s30 }
  0xb5   : > { %vm297_vm5 = vcmp.eq.s32.totalorder (!%p288_p8), %v822_v1, %v296_v24  ;;  %v299_v25 = vstv (!%p288_p8), %s467_s4 }
  0xb6   : > { %v300_v26 = vsel %vm297_vm5, %v299_v25, %v294_v23 }
  0xb7   : > { %301 = vst [vmem:[%s293_s7] sm:$0x1] %v300_v26 }
  0xb8 PF: > { %s468_s8 = sld [smem:[#allocation2 + $0x6]] }
  0xbe   : > { %p303_p13 = scmp.ge.s32.totalorder %s468_s8, %s818_s27  ;;  %p304_p10 = scmp.lt.s32.totalorder %s468_s8, %s835_s6 }
  0xc0   : > { %p305_p6 = pnand %p304_p10, %p303_p13 }
  0xc1   : > { %s309_s9 = ssub.s32 (!%p305_p6), %s468_s8, %s818_s27  ;;  %s469_s10 = sld [smem:[#allocation6 + $0x6]] (!%p305_p6) }
  0xc2   : > { %308 = sbr.rel (%p305_p6) target bundleno = 203 (0xcb), region = 72  ;;  %s470_s11 = sld [smem:[#allocation7 + $0x6]] (!%p305_p6) }
  0xc3   : > { %s310_s17 = scalar_lea.vmem (!%p305_p6), %s824_s5, %s309_s9 [#allocation9] }
  0xc4   : > { %v311_v27 = vld [vmem:[%s310_s17] sm:$0x1] (!%p305_p6) }
  0xc7   : > { %v313_v28 = vstv (!%p305_p6), %s469_s10 }
  0xc8   : > { %vm314_vm6 = vcmp.eq.s32.totalorder (!%p305_p6), %v822_v1, %v313_v28  ;;  %v316_v29 = vstv (!%p305_p6), %s470_s11 }
  0xc9   : > { %v317_v30 = vsel %vm314_vm6, %v316_v29, %v311_v27 }
  0xca   : > { %318 = vst [vmem:[%s310_s17] sm:$0x1] %v317_v30 }
  0xcb PF: > { %s471_s19 = sld [smem:[#allocation2 + $0x7]] }
  0xd1   : > { %p320_p0 = scmp.ge.s32.totalorder %s471_s19, %s818_s27  ;;  %p321_p11 = scmp.lt.s32.totalorder %s471_s19, %s835_s6 }
  0xd3   : > { %p322_p1 = pnand %p321_p11, %p320_p0 }
  0xd4   : > { %s326_s20 = ssub.s32 (!%p322_p1), %s471_s19, %s818_s27  ;;  %s472_s25 = sld [smem:[#allocation6 + $0x7]] (!%p322_p1) }
  0xd5   : > { %325 = sbr.rel (%p322_p1) target bundleno = 222 (0xde), region = 76  ;;  %s473_s26 = sld [smem:[#allocation7 + $0x7]] (!%p322_p1) }
  0xd6   : > { %s327_s28 = scalar_lea.vmem (!%p322_p1), %s824_s5, %s326_s20 [#allocation9] }
  0xd7   : > { %v328_v31 = vld [vmem:[%s327_s28] sm:$0x1] (!%p322_p1) }
  0xda   : > { %v330_v32 = vstv (!%p322_p1), %s472_s25 }
  0xdb   : > { %vm331_vm7 = vcmp.eq.s32.totalorder (!%p322_p1), %v822_v1, %v330_v32  ;;  %v333_v33 = vstv (!%p322_p1), %s473_s26 }
  0xdc   : > { %v334_v34 = vsel %vm331_vm7, %v333_v33, %v328_v31 }
  0xdd   : > { %335 = vst [vmem:[%s327_s28] sm:$0x1] %v334_v34 }
  0xde PF: > { %s479_s6 = sshll.u32 %s720_s16, 10  ;;  %s350_s4 = sshll.u32 %s824_s5, 4  ;;  %s884_s4 = int_to_ptr.vmem [resolvable:$true] %s350_s4 }
  0xdf   : > { %s881_s27 = scalar_lea.hbm %s932_s3, %s479_s6  ;;  %s888_s7 = scalar_lea.sflag [#allocation3], %s184_s24 }
  0xe0   : > { %s596_s8 = scalar_lea.vmem %s884_s4, 1024  ;;  %s676_s16 = smov [#allocation9]  }
  0xe1   : > { %p597_p2 = scmp.ne.s32.totalorder %s884_s4, %s596_s8  ;;  %s600_s9 = sshll.u32 %s676_s16, 4  ;;  %s601_s9 = int_to_ptr.vmem [resolvable:$false] %s600_s9 }
  0xe2   : > { %s602_s10 = scalar_lea.vmem %s601_s9, 2048  ;;  %p603_p3 = scmp.lt.s32.totalorder %s884_s4, %s601_s9 }
  0xe3   : > { %p598_p12 = pnand %p597_p2, %p737_p5  ;;  %p604_p4 = scmp.lt.s32.totalorder %s602_s10, %s596_s8 }
  0xe5   : > { %p599_p9 = pneg %p598_p12  ;;  %p605_p7 = por %p604_p4, %p603_p3 }
  0xe7   : > { %p606_p8 = pnand %p605_p7, %p599_p9 }
  0xe9   : > { %609 = shalt.err (!%p606_p8)
}
  0xea   : > { %s610_s24 = scalar_lea.hbm %s881_s27, 1024  ;;  %s614_s17 = scalar_lea.hbm %s932_s3, 2048 }
  0xeb   : > { %p611_p13 = scmp.ne.s32.totalorder %s881_s27, %s610_s24  ;;  %p615_p0 = scmp.lt.u32.totalorder %s881_s27, %s932_s3 }
  0xec   : > { %p616_p11 = scmp.lt.u32.totalorder %s614_s17, %s610_s24  ;;  %p618_p2 = scmp.lt.u32.totalorder %s610_s24, %s881_s27 }
  0xed   : > { %p612_p10 = pnand %p611_p13, %p737_p5 }
  0xee   : > { %p617_p1 = por %p616_p11, %p615_p0 }
  0xef   : > { %p613_p6 = pneg %p612_p10 }
  0xf0   : > { %p619_p12 = por %p618_p2, %p617_p1 }
  0xf2   : > { %p620_p9 = pnand %p619_p12, %p613_p6 }
  0xf4   : > { %623 = shalt.err (!%p620_p9)
}
  0xf5   : > { %s677_s25 = smov 128   ;;  %s678_s26 = smov 8  }
  0xf6   : > { %492 = dma.vmem_to_hbm [thread:$0]  (%p737_p5), %s884_s4, 1024, %s881_s27, %s888_s7, %s677_s25, %s677_s25, %s678_s26  }
  0xf7 PF: > { %p514_p3 = scmp.ge.s32.totalorder %s670_s15, 2  ;;  %s365_s28 = sand.u32 1, %s658_s12  }
  0xf8   : > { %p944_p4 = scmp.ne.s32.totalorder %s935_s23, 0  ;;  %s366_s6 = scalar_lea.sflag [#allocation3], %s365_s28 }
  0xfa   : > { %p505_p7 = pnand %p514_p3, %p944_p4 }
  0xfc   : > { %653 = dma.done.wait (!%p505_p7), %s366_s6, 1024  }
  0xfd   : > { %655 = vsyncadd (!%p505_p7), %s366_s6, 4294966272  ;;  %p16_p8 = scmp.ge.s32.totalorder %s724_s18, 4   ;;  %s945_s12 = smov %s662_s13 }
  0xfe   : > { %s946_s13 = smov %s666_s14  ;;  %s947_s14 = smov %s735_s21 }
  0xff   : > { %s948_s15 = smov %s724_s18  ;;  %18 = sbr.rel (!%p16_p8) target bundleno = 6 (0x6), region = 118 }
 0x106   :  { %371 = vsyncpa [#allocation3], 1 }
 0x107   :  { %373 = vsyncpa [#allocation3 + $0x1], 1 }
 0x108   :  { %374 = vsyncpa [#allocation4], 1 }
 0x109   :  { %376 = vsyncpa [#allocation4 + $0x1], 1 }
 0x10a   :  { %377 = vsyncpa [#allocation5], 1 }
 0x10b   :  { %379 = vsyncpa [#allocation5 + $0x1], 1 }
 0x10c   :  { %380 = vsyncpa [#allocation8], 1 }

</bundles_post_ra>
